<compile_context>
chip_gen: v7x
topology: tpu7x:2x2x1
jax: 0.10.0
libtpu: 0.0.40
codegen_flags: <defaults>
</compile_context>

<pallas_src>
import jax
import jax.numpy as jnp
from jax.experimental import pallas as pl
from jax.experimental.pallas import tpu as pltpu


_LANE = 128  # lane width: batch tiles are multiples of this


def pg_network_kernel(xT_ref, w1T_ref, b1_ref, wd_ref, bd_ref, o_ref):
    """One batch tile, feature-major (batch along lanes).

    xT_ref : (IN,  TM)  activations, batch in lanes
    w1T_ref: (HID, IN)  fc1 weight (transposed + pre-cast in the wrapper)
    b1_ref : (HID, 1)   fc1 bias (broadcasts along lanes)
    wd_ref : (1,  HID)  fc2 logit-difference weight  (w2[:,1] - w2[:,0])
    bd_ref : (1,  1)    fc2 logit-difference bias    (b2[1]   - b2[0])
    o_ref  : (2,  TM)   [p0 ; p1], lane-dense output block
    """
    xT = xT_ref[...]                                            # (IN, TM)

    # fc1 + ReLU:  H = relu(W1^T @ X^T + b1)  ->  (HID, TM), f32 accumulate.
    h = jnp.dot(w1T_ref[...], xT,
                preferred_element_type=jnp.float32) + b1_ref[...]
    h = jnp.maximum(h, 0.0)                                     # (HID, TM) f32

    # fc2 reduced to the logit difference d = l1 - l0  ->  (1, TM).
    d = jnp.dot(wd_ref[...], h,
                preferred_element_type=jnp.float32) + bd_ref[...]

    # 2-class softmax in closed form: p1 = sigmoid(d), p0 = 1 - p1.
    # No cross-lane reductions; exp() sits on the EUP.  The divide touches a
    # single (1, TM) row, kept exact to preserve f32 accuracy of the result.
    p1 = 1.0 / (1.0 + jnp.exp(-d))
    p0 = 1.0 - p1

    # Lane-dense stores (one sublane row each).
    o_ref[0:1, :] = p0.astype(o_ref.dtype)
    o_ref[1:2, :] = p1.astype(o_ref.dtype)


def _round_up(n, m):
    return ((n + m - 1) // m) * m


def pg_network_forward(x, w1, b1, w2, b2, *, block_cols=2048):
    """x: (B, input_size) row-major.  Returns (B, 2) softmax probabilities.

    Internally runs feature-major: X^T (IN, B_pad) tiled along the lane
    (batch) axis into (IN, TM) blocks; output is a (2, B_pad) lane-dense slab
    transposed back to (B, 2) at the end (wrapper-side layout plumbing).
    """
    B, in_size = x.shape
    hidden = w1.shape[1]
    out_size = w2.shape[1]
    assert out_size == 2, "closed-form 2-class softmax kernel"

    # ---- tile selection: lanes = batch, so TM is a multiple of 128 ---------
    if B <= _LANE:
        tm = _LANE                       # one padded tile for tiny rollouts
    else:
        # At least 2 tiles so v7x's two TensorCores both get a grid step;
        # cap by block_cols to amortize the ~0.35us/step overhead.  Per-tile
        # VMEM after the relayout is only ~ (IN+HID+2)*TM*4 bytes.
        half = _round_up(-(-B // 2), _LANE)
        tm = min(block_cols, half)
    b_pad = _round_up(B, tm)

    # ---- wrapper-side layout & parameter prep (hoisted out of the kernel) --
    xT = jnp.pad(x.T, ((0, 0), (0, b_pad - B)))                 # (IN, B_pad)
    w1T = w1.T.astype(x.dtype)                                  # (HID, IN)
    b1c = b1.reshape(hidden, 1).astype(jnp.float32)             # (HID, 1)
    wd = (w2[:, 1] - w2[:, 0]).astype(jnp.float32).reshape(1, hidden)
    bd = (b2.reshape(-1)[1] - b2.reshape(-1)[0]).astype(jnp.float32).reshape(1, 1)

    grid = (b_pad // tm,)

    outT = pl.pallas_call(
        pg_network_kernel,
        out_shape=jax.ShapeDtypeStruct((2, b_pad), jnp.float32),
        grid_spec=pltpu.PrefetchScalarGridSpec(
            num_scalar_prefetch=0,
            grid=grid,
            in_specs=[
                # Activations: (IN, TM) blocks tiled over the batch grid axis.
                pl.BlockSpec((in_size, tm), lambda i: (0, i)),
                # Weights / biases: constant block index -> VMEM-resident,
                # DMA'd once, not re-fetched per grid step.
                pl.BlockSpec(w1T.shape, lambda i: (0, 0)),
                pl.BlockSpec(b1c.shape, lambda i: (0, 0)),
                pl.BlockSpec(wd.shape, lambda i: (0, 0)),
                pl.BlockSpec(bd.shape, lambda i: (0, 0)),
            ],
            # Lane-dense (2, TM) output blocks.
            out_specs=pl.BlockSpec((2, tm), lambda i: (0, i)),
        ),
        compiler_params=pltpu.CompilerParams(
            # Batch tiles are independent -> shard across TensorCores (v7x).
            dimension_semantics=("parallel",),
            # Per-tile footprint is tiny after the relayout (<< 1 MiB even at
            # TM=4096); 32 MiB leaves plenty of headroom on v7x's 64 MiB VMEM.
            vmem_limit_bytes=32 * 1024 * 1024,
        ),
    )(xT, w1T, b1c, wd, bd)

    return outT[:, :B].T                                        # (B, 2)


def init_params(key, input_size=4, hidden_size=16, output_size=2):
    """Deterministic init mimicking nn.Linear's uniform(-1/sqrt(fan_in), +)."""
    k1, k2, k3, k4 = jax.random.split(key, 4)
    bound1 = 1.0 / (input_size ** 0.5)
    bound2 = 1.0 / (hidden_size ** 0.5)
    # Stored as (in, out) so the math reads x @ W (transposed in the wrapper).
    w1 = jax.random.uniform(k1, (input_size, hidden_size), jnp.float32,
                            -bound1, bound1)
    b1 = jax.random.uniform(k2, (1, hidden_size), jnp.float32, -bound1, bound1)
    w2 = jax.random.uniform(k3, (hidden_size, output_size), jnp.float32,
                            -bound2, bound2)
    b2 = jax.random.uniform(k4, (1, output_size), jnp.float32, -bound2, bound2)
    return w1, b1, w2, b2


if __name__ == "__main__":
    key = jax.random.PRNGKey(0)
    k_x1, k_x2, k_p = jax.random.split(key, 3)

    input_size, hidden_size, output_size = 4, 16, 2
    w1, b1, w2, b2 = init_params(k_p, input_size, hidden_size, output_size)

    def reference(x):
        h = jnp.maximum(x @ w1 + b1, 0.0)
        return jax.nn.softmax(h @ w2 + b2, axis=1)

    # Case 1: tiny batch (original RL rollout shape) -> single 128-lane tile.
    x_small = jax.random.normal(k_x1, (8, input_size), jnp.float32)
    p_small = jax.block_until_ready(pg_network_forward(x_small, w1, b1, w2, b2))
    assert p_small.shape == (8, output_size)
    assert jnp.allclose(p_small, reference(x_small), atol=1e-4, rtol=1e-4)
    assert jnp.allclose(jnp.sum(p_small, axis=1), 1.0, atol=1e-5)

    # Case 2: batched rollouts -> 2 lane-dense tiles of 256 cols + padding;
    # exercises the multi-step grid and the >=2-tile megacore split.
    x_big = jax.random.normal(k_x2, (300, input_size), jnp.float32)
    p_big = jax.block_until_ready(pg_network_forward(x_big, w1, b1, w2, b2))
    assert p_big.shape == (300, output_size)
    assert jnp.allclose(p_big, reference(x_big), atol=1e-4, rtol=1e-4)
    assert jnp.allclose(jnp.sum(p_big, axis=1), 1.0, atol=1e-5)

    print("KERNEL_OK")
</pallas_src>

<mosaic_0001>
module attributes {stable_mosaic.version = 11 : i64} {
  func.func @pg_network_kernel(%arg0: i32, %arg1: memref<4x128xf32, #tpu.memory_space<vmem>>, %arg2: memref<16x4xf32, #tpu.memory_space<vmem>>, %arg3: memref<16x1xf32, #tpu.memory_space<vmem>>, %arg4: memref<1x16xf32, #tpu.memory_space<vmem>>, %arg5: memref<1x1xf32, #tpu.memory_space<vmem>>, %arg6: memref<2x128xf32, #tpu.memory_space<vmem>>) attributes {dimension_semantics = [#tpu.dimension_semantics<parallel>], iteration_bounds = array<i64: 1>, scalar_prefetch = 0 : i64, scratch_operands = 0 : i64, tpu.core_type = #tpu.core_type<tc>, window_params = [{transform_indices = @transform_0, window_bounds = array<i64: 4, 128>}, {pipeline_mode = #tpu.pipeline_mode<synchronous>, transform_indices = @transform_1, window_bounds = array<i64: 16, 4>}, {pipeline_mode = #tpu.pipeline_mode<synchronous>, transform_indices = @transform_2, window_bounds = array<i64: 16, 1>}, {pipeline_mode = #tpu.pipeline_mode<synchronous>, transform_indices = @transform_3, window_bounds = array<i64: 1, 16>}, {pipeline_mode = #tpu.pipeline_mode<synchronous>, transform_indices = @transform_4, window_bounds = array<i64: 1, 1>}, {transform_indices = @transform_5, window_bounds = array<i64: 2, 128>}]} {
    %c0 = arith.constant 0 : index
    %c0_0 = arith.constant 0 : index
    %0 = vector.load %arg1[%c0, %c0_0] : memref<4x128xf32, #tpu.memory_space<vmem>>, vector<4x128xf32>
    %c0_1 = arith.constant 0 : index
    %c0_2 = arith.constant 0 : index
    %1 = vector.load %arg2[%c0_1, %c0_2] : memref<16x4xf32, #tpu.memory_space<vmem>>, vector<16x4xf32>
    %cst = arith.constant dense<0.000000e+00> : vector<16x128xf32>
    %2 = tpu.matmul %1, %0, %cst {dimension_numbers = #tpu.dot_dimension_numbers<[1], [0], [0], [1], [0, 0, 1, 1], [], []>} : vector<16x4xf32>, vector<4x128xf32>, vector<16x128xf32> -> vector<16x128xf32>
    %c0_3 = arith.constant 0 : index
    %c0_4 = arith.constant 0 : index
    %3 = vector.load %arg3[%c0_3, %c0_4] : memref<16x1xf32, #tpu.memory_space<vmem>>, vector<16x1xf32>
    %4 = vector.broadcast %3 : vector<16x1xf32> to vector<16x128xf32>
    %5 = arith.addf %2, %4 : vector<16x128xf32>
    %cst_5 = arith.constant 0.000000e+00 : f32
    %6 = vector.broadcast %cst_5 : f32 to vector<16x128xf32>
    %7 = arith.maximumf %5, %6 : vector<16x128xf32>
    %c0_6 = arith.constant 0 : index
    %c0_7 = arith.constant 0 : index
    %8 = vector.load %arg4[%c0_6, %c0_7] : memref<1x16xf32, #tpu.memory_space<vmem>>, vector<1x16xf32>
    %cst_8 = arith.constant dense<0.000000e+00> : vector<1x128xf32>
    %9 = tpu.matmul %8, %7, %cst_8 {dimension_numbers = #tpu.dot_dimension_numbers<[1], [0], [0], [1], [0, 0, 1, 1], [], []>} : vector<1x16xf32>, vector<16x128xf32>, vector<1x128xf32> -> vector<1x128xf32>
    %c0_9 = arith.constant 0 : index
    %c0_10 = arith.constant 0 : index
    %10 = vector.load %arg5[%c0_9, %c0_10] : memref<1x1xf32, #tpu.memory_space<vmem>>, vector<1x1xf32>
    %11 = vector.broadcast %10 : vector<1x1xf32> to vector<1x128xf32>
    %12 = arith.addf %9, %11 : vector<1x128xf32>
    %cst_11 = arith.constant 0.000000e+00 : f32
    %13 = vector.broadcast %cst_11 : f32 to vector<1x128xf32>
    %14 = arith.subf %13, %12 : vector<1x128xf32>
    %15 = math.exp %14 : vector<1x128xf32>
    %cst_12 = arith.constant 1.000000e+00 : f32
    %16 = vector.broadcast %cst_12 : f32 to vector<1x128xf32>
    %17 = arith.addf %16, %15 : vector<1x128xf32>
    %cst_13 = arith.constant 1.000000e+00 : f32
    %18 = vector.broadcast %cst_13 : f32 to vector<1x128xf32>
    %19 = arith.divf %18, %17 : vector<1x128xf32>
    %cst_14 = arith.constant 1.000000e+00 : f32
    %20 = vector.broadcast %cst_14 : f32 to vector<1x128xf32>
    %21 = arith.subf %20, %19 : vector<1x128xf32>
    %c0_15 = arith.constant 0 : index
    %c0_16 = arith.constant 0 : index
    %22 = vector.load %arg6[%c0_15, %c0_16] : memref<2x128xf32, #tpu.memory_space<vmem>>, vector<1x128xf32>
    tpu.vector_store %arg6[%c0_15, %c0_16], %21 {strides = array<i32>} : memref<2x128xf32, #tpu.memory_space<vmem>>, vector<1x128xf32>,
    %c1 = arith.constant 1 : index
    %c0_17 = arith.constant 0 : index
    %23 = vector.load %arg6[%c1, %c0_17] : memref<2x128xf32, #tpu.memory_space<vmem>>, vector<1x128xf32>
    tpu.vector_store %arg6[%c1, %c0_17], %19 {strides = array<i32>} : memref<2x128xf32, #tpu.memory_space<vmem>>, vector<1x128xf32>,
    return
  }
  func.func @transform_0(%arg0: i32) -> (i32, i32) {
    %c0_i32 = arith.constant 0 : i32
    %c0_i32_0 = arith.constant 0 : i32
    return %c0_i32, %arg0 : i32, i32
  }
  func.func @transform_1(%arg0: i32) -> (i32, i32) {
    %c0_i32 = arith.constant 0 : i32
    %c0_i32_0 = arith.constant 0 : i32
    %c0_i32_1 = arith.constant 0 : i32
    return %c0_i32, %c0_i32_0 : i32, i32
  }
  func.func @transform_2(%arg0: i32) -> (i32, i32) {
    %c0_i32 = arith.constant 0 : i32
    %c0_i32_0 = arith.constant 0 : i32
    %c0_i32_1 = arith.constant 0 : i32
    return %c0_i32, %c0_i32_0 : i32, i32
  }
  func.func @transform_3(%arg0: i32) -> (i32, i32) {
    %c0_i32 = arith.constant 0 : i32
    %c0_i32_0 = arith.constant 0 : i32
    %c0_i32_1 = arith.constant 0 : i32
    return %c0_i32, %c0_i32_0 : i32, i32
  }
  func.func @transform_4(%arg0: i32) -> (i32, i32) {
    %c0_i32 = arith.constant 0 : i32
    %c0_i32_0 = arith.constant 0 : i32
    %c0_i32_1 = arith.constant 0 : i32
    return %c0_i32, %c0_i32_0 : i32, i32
  }
  func.func @transform_5(%arg0: i32) -> (i32, i32) {
    %c0_i32 = arith.constant 0 : i32
    %c0_i32_0 = arith.constant 0 : i32
    return %c0_i32, %arg0 : i32, i32
  }
}

</mosaic_0001>

<bundles_post_ra>
// kernel: tpu_custom_call.1
= control target key start
LH: loop header
LB: loop body
LE: loop exit
PB: predicated region body
PF: predicated region fallthrough
CT: control target
= control target key end

     0   :  { %s362_s0 = inlined_call_operand.vmem [shape: f32[4,128], index: 0, kind: input, shape index: {}]   ;;  %s363_s1 = inlined_call_operand.vmem [shape: f32[16,4], index: 1, kind: input, shape index: {}]   ;;  %s364_s2 = inlined_call_operand.vmem [shape: f32[16,1], index: 2, kind: input, shape index: {}]   ;;  %s365_s3 = inlined_call_operand.vmem [shape: f32[1,16], index: 3, kind: input, shape index: {}]   ;;  %s366_s4 = inlined_call_operand.<no memory space> [shape: f32[1,1], index: 4, kind: input, shape index: {}]   ;;  %s367_s5 = inlined_call_operand.hbm [shape: f32[2,128], index: 5, kind: output, shape index: {}]  }
   0x1   :  { %v10_v0 = vstv %s366_s4 }
   0x2   :  { %11 = vst [vmem:[#allocation2] sm:$0x1] %v10_v0 }
   0x3   :  { %v23_v1 = vld [vmem:[%s362_s0] sm:$0xf]  ;;  %vm45_vm0 = vcmask 1043456   ;;  %vm38_vm1 = vcmask 31744   ;;  %v25_v3 = vld [vmem:[%s363_s1 + $0x8] sm:$0xff] }
   0x4   :  { %v24_v2 = vld [vmem:[%s363_s1] sm:$0xff]  ;;  %244 = vmatprep.subr.msk.mxu0 %vm45_vm0, %v23_v1 }
   0x5   :  { %246 = vmatprep.mubr.msk.f32.mxu0 %vm38_vm1, %v24_v2  ;;  %v26_v4 = vld [vmem:[%s364_s2] sm:$0xff] }
   0x6   :  { %12 = vsyncpa [#allocation4], 0  ;;  %245 = vmatpush3.msk.msra.mxu0 %vm45_vm0, %v23_v1  ;;  %v294_v5 = vmov 0   ;;  %v27_v6 = vld [vmem:[%s364_s2 + $0x8] sm:$0xff]  ;;  %v295_v7 = vmov 0.0|0.0   ;;  %vm296_vm2 = vmmov 0   ;;  %v133_v20 = vlaneseq }
   0x7   :  { %264 = vset.pattern.permute.xlu0 %v294_v5  ;;  %247 = vmatmul.mubr.msk.f32.vlgmr.msra.gmra.mrb[0].mxu0 %vm38_vm1, %v25_v3  ;;  %v297_v8 = vmov 0.0   ;;  %v126_v19 = vld [vmem:[%s365_s3] sm:$0x1]  ;;  %vm137_vm3 = vcmask 130048   ;;  %s298_s28 = smov [#allocation3]  }
   0x8   :  { %30 = vperm.xlu0 %264, %v26_v4   ;;  %265 = vset.pattern.permute.xlu1 %v294_v5  ;;  %v134_v21 = vshrl.u32 %v133_v20, 7  ;;  %s226_s29 = sshll.u32 %s298_s28, 4  ;;  %s227_s29 = int_to_ptr.vmem [resolvable:$true] %s226_s29 }
   0x9   :  { %256 = vmatprep.subr.bf16.mxu1 %v295_v7  ;;  %253 = vmatprep.mubr.msk.f32.mxu1 %vm296_vm2, %v297_v8  ;;  %v127_v9 = vld [vmem:[#allocation2] sm:$0x1]  ;;  %s270_s3 = scalar_lea.vmem %s227_s29, 32  ;;  %p275_p1 = scmp.lt.s32.totalorder %s227_s29, %s227_s29 }
   0xa   :  { %130 = vperm.xlu1 %265, %v127_v9   ;;  %v135_v22 = vsub.s32 0, %v134_v21  ;;  %p271_p0 = scmp.ne.s32.totalorder %s227_s29, %s270_s3  ;;  %p276_p2 = scmp.lt.s32.totalorder %s270_s3, %s270_s3 }
   0xc   :  { %35 = vperm.xlu0 %264, %v27_v6   ;;  %p277_p3 = por %p276_p2, %p275_p1 }
   0xe   :  { %p278_p4 = pnand %p277_p3, %p271_p0 }
  0x87   :  { %v31_v10 = vpop.permute.xlu0 %30 }
  0x89   :  { %v131_v23 = vpop.permute.xlu1 %130 }
  0x8a   :  { %v136_v24 = vrot.slane %v131_v23, %v135_v22 }
  0x8b   :  { %v36_v11 = vpop.permute.xlu0 %35 }
  0xda   :  { %v248_v12 = vpop.f32.mrb[0].mxu0 }
  0xdb   :  { %v121_v13 = vadd.f32 %v248_v12, %v36_v11  ;;  %v115_v14 = vpop.f32.mrb[1].mxu0 }
  0xdc   :  { %v116_v15 = vadd.f32 %v115_v14, %v31_v10 }
  0xdd   :  { %v125_v16 = vmax.f32 %v121_v13, 0.0 }
  0xde   :  { %v124_v17 = vmax.f32 %v116_v15, 0.0 }
  0xe0   :  { %v257_v18 = vpack.c.bf16 %v125_v16, %v124_v17 }
  0xe2   :  { %258 = vmatpush3.bf16.msra.mxu1 %v257_v18 }
  0xe5   :  { %254 = vmatmul.mubr.msk.f32.vlgmr.msra.gmra.mrb[0].mxu1 %vm137_vm3, %v126_v19 }
 0x1b8   :  { %v207_v25 = vpop.f32.mrb[0].mxu1 }
 0x1b9   :  { %v208_v26 = vadd.f32 %v207_v25, %v136_v24  ;;  %v255_v27 = vpop.f32.mrb[1].mxu1 }
 0x1bb   :  { %v211_v28 = vsub.f32 0.0, %v208_v26 }
 0x1bd   :  { %v212_v29 = vmul.f32 1.442695, %v211_v28 }
 0x1bf   :  { %266 = vpow2.f32 %v212_v29 }
 0x1c9   :  { %v267_v30 = vpop.eup %266 }
 0x1ca   :  { %v214_v31 = vadd.f32 1.0, %v267_v30 }
 0x1cc   :  { %268 = vrcp.f32 %v214_v31 }
 0x1d6   :  { %v269_v32 = vpop.eup %268 }
 0x1d7   :  { %219 = vst [vmem:[#allocation3 + $0x1] sm:$0x1] %v269_v32  ;;  %v217_v33 = vsub.f32 1.0, %v269_v32 }
 0x1d9   :  { %218 = vst [vmem:[#allocation3] sm:$0x1] %v217_v33 }
 0x1da   :  { %281 = shalt.err (!%p278_p4)
}
 0x1db   :  { %s282_s7 = scalar_lea.hbm %s367_s5, 32 }
 0x1dc   :  { %p283_p5 = scmp.ne.s32.totalorder %s367_s5, %s282_s7  ;;  %p286_p6 = scmp.lt.u32.totalorder %s282_s7, %s367_s5 }
 0x1de   :  { %p288_p7 = pnand %p286_p6, %p283_p5 }
 0x1e0   :  { %291 = shalt.err (!%p288_p7)
}
 0x1e1   :  { %229 = dma.vmem_to_hbm [thread:$0]  %s227_s29, 32, %s367_s5, [#allocation4]  }
 0x1e2   :  { %292 = dma.done.wait [#allocation4], 32  }
 0x1e3   :  { %293 = vsyncadd [#allocation4], 4294967264 }
 0x1e4   :  { %233 = vsyncpa [#allocation4], 1 }

</bundles_post_ra>
